<compile_context>
chip_gen: v6e
topology: v6e:2x2x1
jax: 0.10.0
libtpu: 0.0.40
codegen_flags: <defaults>
</compile_context>

<pallas_src>
import functools
import math

import jax
import jax.numpy as jnp
from jax import lax
from jax.experimental import pallas as pl
from jax.experimental.pallas import tpu as pltpu


def _round_up(x, n):
    return ((x + n - 1) // n) * n


def _arcface_kernel(f_ref, w_ref, winv_ref, label_ref, out_ref, *,
                    s, cos_m, sin_m, num_classes):
    # f_ref    : (tb, D)  compute_dtype  -- already L2-normalised rows
    # w_ref    : (tc, D)  compute_dtype  -- raw weight tile (original layout)
    # winv_ref : (1, tc)  f32            -- per-class inverse L2 norms
    # label_ref: (tb, 1)  int32
    # out_ref  : (tb, tc)
    j = pl.program_id(1)
    tb, tc = out_ref.shape

    # (tb, D) @ (tc, D)^T on the MXU: contract both last dims ("NT" pattern).
    cos_raw = lax.dot_general(
        f_ref[...], w_ref[...],
        dimension_numbers=(((1,), (1,)), ((), ())),
        preferred_element_type=jnp.float32)                     # (tb, tc) f32

    # Fold the per-class L2 norm into the small output tile (tb*tc mults, f32).
    cos_th = cos_raw * winv_ref[...]

    sin_th = jnp.sqrt(jnp.clip(1.0 - cos_th * cos_th, 0.0, 1.0))
    cos_th_plus_m = cos_th * cos_m - sin_th * sin_m

    # one-hot scatter on dim=1 == select where (global class index == label)
    col_ids = lax.broadcasted_iota(jnp.int32, (tb, tc), 1) + j * tc
    picked = jnp.where(col_ids == label_ref[...], cos_th_plus_m, cos_th)
    # Mask padded class columns (C % tc != 0) so garbage lanes never write back.
    picked = jnp.where(col_ids < num_classes, picked, 0.0)

    out_ref[...] = (s * picked).astype(out_ref.dtype)


def _pick_tiles(B, D, C, compute_bytes, out_bytes, budget_bytes):
    """Pick (batch_tile, class_tile) whose double-buffered footprint fits budget."""
    tb = B if B <= 256 else 256
    c_pad = _round_up(C, 128)
    tc = min(c_pad, 4096)
    # Prefer >= 2 class tiles so the "parallel" axes split across v7x's two TCs.
    if c_pad >= 256:
        tc = min(tc, _round_up((c_pad + 1) // 2, 128))

    def footprint(tc_):
        return (2 * tc_ * D * compute_bytes      # double-buffered weight tiles
                + 2 * tb * tc_ * out_bytes       # double-buffered output tiles
                + 2 * tc_ * 4                    # per-class inverse norms
                + 2 * tb * D * compute_bytes     # feature block
                + 2 * tb * 4                     # labels
                + (64 << 10))                    # slack

    while tc > 128 and footprint(tc) > budget_bytes:
        tc -= 128
    return tb, tc


def arcface_forward(feature, weight, label, *, s=30.0, m=0.5,
                    class_tile=None, batch_tile=None,
                    compute_dtype=jnp.bfloat16, out_dtype=jnp.float32,
                    vmem_budget_bytes=12 << 20):
    """feature: (B, ...) -> flattened to (B, D); weight: (C, D); label: (B,) int.
    Returns (B, C) ArcFace logits (already scaled by s).

    compute_dtype=bf16 streams the weight at half the HBM bytes (the dominant
    stream) and uses the fast bf16 MXU path; all accumulation / epilogue math
    stays f32.  For repeated calls, pre-cast the weight to bf16 once and pass
    it in to avoid a per-call cast pass."""
    B = feature.shape[0]
    feature = feature.reshape(B, -1).astype(jnp.float32)         # feature.view(B, -1)
    D = feature.shape[1]
    C, D2 = weight.shape
    assert D == D2, f"feature dim {D} != weight in_features {D2}"

    # F.normalize(feature, dim=1): hoisted out of the kernel (one cheap B*D pass).
    f_inv = lax.rsqrt(jnp.maximum(
        jnp.sum(feature * feature, axis=1, keepdims=True), 1e-24))
    f_n = (feature * f_inv).astype(compute_dtype)                # (B, D)

    # Per-class inverse L2 norm, computed once (f32) and folded in post-matmul.
    w32 = weight.astype(jnp.float32)
    w_inv = lax.rsqrt(jnp.maximum(
        jnp.sum(w32 * w32, axis=1, keepdims=True), 1e-24)).reshape(1, C)

    # Weight streams in compute_dtype, original (C, D) layout -- no transpose copy.
    w_c = weight.astype(compute_dtype)                            # (C, D)
    label2d = label.astype(jnp.int32).reshape(B, 1)

    compute_bytes = jnp.dtype(compute_dtype).itemsize
    out_bytes = jnp.dtype(out_dtype).itemsize
    tb_auto, tc_auto = _pick_tiles(B, D, C, compute_bytes, out_bytes,
                                   vmem_budget_bytes)
    tb = batch_tile if batch_tile is not None else tb_auto
    tc = class_tile if class_tile is not None else tc_auto
    assert tc % 128 == 0, "class tile must be lane-aligned (multiple of 128)"
    assert tb == B or tb % 8 == 0, "batch tile must be B or a multiple of 8"

    grid = (pl.cdiv(B, tb), pl.cdiv(C, tc))

    kernel = functools.partial(
        _arcface_kernel,
        s=float(s), cos_m=float(math.cos(m)), sin_m=float(math.sin(m)),
        num_classes=C,
    )

    return pl.pallas_call(
        kernel,
        out_shape=jax.ShapeDtypeStruct((B, C), out_dtype),
        grid=grid,
        in_specs=[
            pl.BlockSpec((tb, D), lambda i, j: (i, 0)),    # normalized feature
            pl.BlockSpec((tc, D), lambda i, j: (j, 0)),    # weight tile (pipelined)
            pl.BlockSpec((1, tc), lambda i, j: (0, j)),    # per-class inv norms
            pl.BlockSpec((tb, 1), lambda i, j: (i, 0)),    # labels
        ],
        out_specs=pl.BlockSpec((tb, tc), lambda i, j: (i, j)),
        compiler_params=pltpu.CompilerParams(
            # Both axes independent -> v7x megacore splits the grid product.
            dimension_semantics=("parallel", "parallel"),
        ),
    )(f_n, w_c, w_inv, label2d)


def _reference(feature, weight, label, *, s=30.0, m=0.5):
    eps = 1e-12
    f = feature / jnp.maximum(
        jnp.sqrt(jnp.sum(feature * feature, axis=-1, keepdims=True)), eps)
    w = weight / jnp.maximum(
        jnp.sqrt(jnp.sum(weight * weight, axis=-1, keepdims=True)), eps)
    cos_th = f @ w.T
    sin_th = jnp.sqrt(jnp.clip(1.0 - cos_th ** 2, 0.0, 1.0))
    cos_th_plus_m = cos_th * math.cos(m) - sin_th * math.sin(m)
    one_hot = jax.nn.one_hot(label, weight.shape[0], dtype=jnp.float32)
    return (one_hot * cos_th_plus_m + (1.0 - one_hot) * cos_th) * s


if __name__ == "__main__":
    # Small shapes consistent with the module (in_features=128, out_features=256).
    B, D, C = 8, 128, 256
    key = jax.random.PRNGKey(0)
    k_feat, k_w, k_lbl = jax.random.split(key, 3)

    feature = jax.random.normal(k_feat, (B, D), dtype=jnp.float32)

    # Deterministic Xavier-uniform init for weight of shape (out_features, in_features).
    limit = math.sqrt(6.0 / (C + D))
    weight = jax.random.uniform(k_w, (C, D), minval=-limit, maxval=limit,
                                dtype=jnp.float32)

    label = jax.random.randint(k_lbl, (B,), 0, C, dtype=jnp.int32)

    ref = _reference(feature, weight, label, s=30.0, m=0.5)

    # Tight check on the f32 compute path (class_tile=128 -> 2-step class grid).
    out_f32 = arcface_forward(feature, weight, label, s=30.0, m=0.5,
                              class_tile=128, compute_dtype=jnp.float32)
    out_f32 = jax.block_until_ready(out_f32)
    assert out_f32.shape == (B, C)
    assert jnp.allclose(out_f32, ref, atol=1e-3, rtol=1e-3), "f32 path mismatch"

    # Default fast path: bf16 weight/feature stream, f32 accumulate + f32 epilogue.
    out_bf16 = arcface_forward(feature, weight, label, s=30.0, m=0.5,
                               class_tile=128)
    out_bf16 = jax.block_until_ready(out_bf16)
    assert out_bf16.shape == (B, C)
    assert jnp.allclose(out_bf16, ref, atol=1e-1, rtol=1e-2), "bf16 path mismatch"

    print("KERNEL_OK")
</pallas_src>

<mosaic_0001>
module attributes {stable_mosaic.version = 11 : i64} {
  func.func @_arcface_kernel(%arg0: i32, %arg1: i32, %arg2: memref<8x128xf32, #tpu.memory_space<vmem>>, %arg3: memref<128x128xf32, #tpu.memory_space<vmem>>, %arg4: memref<1x128xf32, #tpu.memory_space<vmem>>, %arg5: memref<8x1xi32, #tpu.memory_space<vmem>>, %arg6: memref<8x128xf32, #tpu.memory_space<vmem>>) attributes {dimension_semantics = [#tpu.dimension_semantics<parallel>, #tpu.dimension_semantics<parallel>], iteration_bounds = array<i64: 1, 2>, scalar_prefetch = 0 : i64, scratch_operands = 0 : i64, tpu.core_type = #tpu.core_type<tc>, window_params = [{transform_indices = @transform_0, window_bounds = array<i64: 8, 128>}, {transform_indices = @transform_1, window_bounds = array<i64: 128, 128>}, {transform_indices = @transform_2, window_bounds = array<i64: 1, 128>}, {transform_indices = @transform_3, window_bounds = array<i64: 8, 1>}, {transform_indices = @transform_4, window_bounds = array<i64: 8, 128>}]} {
    %c0 = arith.constant 0 : index
    %c0_0 = arith.constant 0 : index
    %0 = vector.load %arg2[%c0, %c0_0] : memref<8x128xf32, #tpu.memory_space<vmem>>, vector<8x128xf32>
    %c0_1 = arith.constant 0 : index
    %c0_2 = arith.constant 0 : index
    %1 = vector.load %arg3[%c0_1, %c0_2] : memref<128x128xf32, #tpu.memory_space<vmem>>, vector<128x128xf32>
    %cst = arith.constant dense<0.000000e+00> : vector<8x128xf32>
    %2 = tpu.matmul %0, %1, %cst {dimension_numbers = #tpu.dot_dimension_numbers<[1], [1], [0], [0], [0, 0, 1, 0], [], []>} : vector<8x128xf32>, vector<128x128xf32>, vector<8x128xf32> -> vector<8x128xf32>
    %c0_3 = arith.constant 0 : index
    %c0_4 = arith.constant 0 : index
    %3 = vector.load %arg4[%c0_3, %c0_4] : memref<1x128xf32, #tpu.memory_space<vmem>>, vector<1x128xf32>
    %4 = vector.broadcast %3 : vector<1x128xf32> to vector<8x128xf32>
    %5 = arith.mulf %2, %4 : vector<8x128xf32>
    %6 = arith.mulf %5, %5 : vector<8x128xf32>
    %cst_5 = arith.constant 1.000000e+00 : f32
    %7 = vector.broadcast %cst_5 : f32 to vector<8x128xf32>
    %8 = arith.subf %7, %6 : vector<8x128xf32>
    %cst_6 = arith.constant 0.000000e+00 : f32
    %cst_7 = arith.constant 1.000000e+00 : f32
    %9 = vector.broadcast %cst_6 : f32 to vector<8x128xf32>
    %10 = arith.maximumf %9, %8 : vector<8x128xf32>
    %11 = vector.broadcast %cst_7 : f32 to vector<8x128xf32>
    %12 = arith.minimumf %11, %10 : vector<8x128xf32>
    %13 = math.sqrt %12 : vector<8x128xf32>
    %cst_8 = arith.constant 0.87758255 : f32
    %14 = vector.broadcast %cst_8 : f32 to vector<8x128xf32>
    %15 = arith.mulf %5, %14 : vector<8x128xf32>
    %cst_9 = arith.constant 0.47942555 : f32
    %16 = vector.broadcast %cst_9 : f32 to vector<8x128xf32>
    %17 = arith.mulf %13, %16 : vector<8x128xf32>
    %18 = arith.subf %15, %17 : vector<8x128xf32>
    %19 = tpu.iota {dimensions = array<i32: 1>} : vector<8x128xi32>
    %c128_i32 = arith.constant 128 : i32
    %20 = arith.muli %arg1, %c128_i32 : i32
    %21 = vector.broadcast %20 : i32 to vector<8x128xi32>
    %22 = arith.addi %19, %21 : vector<8x128xi32>
    %c0_10 = arith.constant 0 : index
    %c0_11 = arith.constant 0 : index
    %23 = vector.load %arg5[%c0_10, %c0_11] : memref<8x1xi32, #tpu.memory_space<vmem>>, vector<8x1xi32>
    %24 = vector.broadcast %23 : vector<8x1xi32> to vector<8x128xi32>
    %25 = arith.cmpi eq, %22, %24 : vector<8x128xi32>
    %26 = arith.select %25, %18, %5 : vector<8x128xi1>, vector<8x128xf32>
    %c256_i32 = arith.constant 256 : i32
    %27 = vector.broadcast %c256_i32 : i32 to vector<8x128xi32>
    %28 = arith.cmpi slt, %22, %27 : vector<8x128xi32>
    %cst_12 = arith.constant 0.000000e+00 : f32
    %29 = vector.broadcast %cst_12 : f32 to vector<8x128xf32>
    %30 = arith.select %28, %26, %29 : vector<8x128xi1>, vector<8x128xf32>
    %cst_13 = arith.constant 3.000000e+01 : f32
    %31 = vector.broadcast %cst_13 : f32 to vector<8x128xf32>
    %32 = arith.mulf %31, %30 : vector<8x128xf32>
    %c0_14 = arith.constant 0 : index
    %c0_15 = arith.constant 0 : index
    %33 = vector.load %arg6[%c0_14, %c0_15] : memref<8x128xf32, #tpu.memory_space<vmem>>, vector<8x128xf32>
    tpu.vector_store %arg6[%c0_14, %c0_15], %32 {strides = array<i32>} : memref<8x128xf32, #tpu.memory_space<vmem>>, vector<8x128xf32>,
    return
  }
  func.func @transform_0(%arg0: i32, %arg1: i32) -> (i32, i32) {
    %c0_i32 = arith.constant 0 : i32
    %c0_i32_0 = arith.constant 0 : i32
    return %arg0, %c0_i32 : i32, i32
  }
  func.func @transform_1(%arg0: i32, %arg1: i32) -> (i32, i32) {
    %c0_i32 = arith.constant 0 : i32
    %c0_i32_0 = arith.constant 0 : i32
    return %arg1, %c0_i32 : i32, i32
  }
  func.func @transform_2(%arg0: i32, %arg1: i32) -> (i32, i32) {
    %c0_i32 = arith.constant 0 : i32
    %c0_i32_0 = arith.constant 0 : i32
    return %c0_i32, %arg1 : i32, i32
  }
  func.func @transform_3(%arg0: i32, %arg1: i32) -> (i32, i32) {
    %c0_i32 = arith.constant 0 : i32
    %c0_i32_0 = arith.constant 0 : i32
    return %arg0, %c0_i32 : i32, i32
  }
  func.func @transform_4(%arg0: i32, %arg1: i32) -> (i32, i32) {
    %c0_i32 = arith.constant 0 : i32
    return %arg0, %arg1 : i32, i32
  }
}

</mosaic_0001>

<bundles_post_ra>
// kernel: tpu_custom_call.1
= control target key start
LH: loop header
LB: loop body
LE: loop exit
PB: predicated region body
PF: predicated region fallthrough
CT: control target
= control target key end

     0   :  { %9 = vsyncpa [#allocation3], 0  ;;  %s989_s0 = inlined_call_operand.vmem [shape: f32[8,128], index: 0, kind: input, shape index: {}]   ;;  %s990_s1 = inlined_call_operand.hbm [shape: f32[256,128], index: 1, kind: input, shape index: {}]   ;;  %s991_s2 = inlined_call_operand.vmem [shape: f32[1,256], index: 2, kind: input, shape index: {}]   ;;  %s992_s3 = inlined_call_operand.vmem [shape: s32[8,1], index: 3, kind: input, shape index: {}]   ;;  %s993_s4 = inlined_call_operand.hbm [shape: f32[8,256], index: 4, kind: output, shape index: {}]  }
   0x1   :  { %11 = vsyncpa [#allocation3 + $0x1], 0 }
   0x2   :  { %12 = vsyncpa [#allocation4], 0 }
   0x3   :  { %14 = vsyncpa [#allocation4 + $0x1], 0  ;;  %s821_s15 = smov 0   ;;  %s823_s16 = smov 0  }
   0x4   :  { %s825_s17 = smov 0   ;;  %s827_s18 = smov 0  }
   0x5   :  { %s829_s19 = smov 0   ;;  %s831_s20 = smov 0  }
   0x6 LB: > { %s538_s21 = sadd.s32 4294967295, %s787_s20   ;;  %s539_s22 = sadd.s32 4294967294, %s787_s20   ;;  %s787_s20 = sphi %s831_s20, %s20_s20   ;;  %s783_s19 = sphi %s829_s19, %s1004_s19   ;;  %s779_s18 = sphi %s827_s18, %s1003_s18   ;;  %s775_s17 = sphi %s825_s17, %s1002_s17   ;;  %s771_s16 = sphi %s823_s16, %s1001_s16   ;;  %s767_s15 = sphi %s821_s15, %s1000_s15  }
   0x7   : > { %s29_s23 = sadd.s32 1, %s783_s19  ;;  %s65_s24 = sadd.s32 1, %s775_s17 }
   0x8   : > { %p30_p0 = scmp.ge.s32.totalorder %s29_s23, 2  ;;  %p72_p1 = scmp.ne.s32.totalorder %s775_s17, %s771_s16 }
   0x9   : > { %p73_p2 = scmp.eq.s32.totalorder %s787_s20, 0  ;;  %p78_p3 = scmp.ne.s32.totalorder %s771_s16, %s767_s15 }
   0xa   : > { %s1006_s23 = smov (%p30_p0, %s29_s23), 0  ;;  %p79_p5 = scmp.eq.s32.totalorder %s538_s21, 0 }
   0xb   : > { %p862_p4 = por %p73_p2, %p72_p1  ;;  %s62_s26 = ssub.s32 %s783_s19, %s1006_s23 }
   0xc   : > { %p156_p6 = scmp.eq.s32.totalorder %s538_s21, 1  ;;  %p63_p7 = scmp.eq.s32.totalorder %s62_s26, 0 }
   0xd   : > { %p868_p8 = por %p79_p5, %p78_p3  ;;  %p162_p10 = scmp.eq.s32.totalorder %s539_s22, 1 }
   0xe   : > { %p872_p9 = por %p156_p6, %p72_p1  ;;  %p621_p13 = scmp.lt.s32.totalorder %s787_s20, 2 }
   0xf   : > { %s877_s29 = scalar_select %p63_p7, %s775_s17, %s65_s24  }
  0x10   : > { %p879_p11 = por %p162_p10, %p78_p3  ;;  %s196_s5 = sand.u32 1, %s775_s17  }
  0x11   : > { %s544_s6 = sshll.u32 %s196_s5, 7  ;;  %s556_s7 = sshll.u32 %s783_s19, 11 }
  0x12   : > { %s206_s10 = scalar_lea.hbm %s990_s1, %s556_s7  ;;  %s200_s11 = scalar_lea.vmem [#allocation2], %s544_s6 }
  0x13   : > { %s207_s12 = sshll.u32 %s200_s11, 4  ;;  %p892_p0 = pnand %p621_p13, %p862_p4  ;;  %s208_s12 = int_to_ptr.vmem [resolvable:$true] %s207_s12 }
  0x14   : > { %p547_p1 = scmp.ge.s32.totalorder %s787_s20, 1  ;;  %s197_s14 = scalar_lea.sflag [#allocation3], %s196_s5 }
  0x15   : > { %p681_p2 = pneg %p892_p0  ;;  %s692_s21 = scalar_lea.vmem %s208_s12, 2048 }
  0x16   : > { %p693_p3 = scmp.ne.s32.totalorder %s208_s12, %s692_s21  ;;  %s789_s22 = smov [#allocation2]  }
  0x17   : > { %s697_s24 = sshll.u32 %s789_s22, 4  ;;  %s698_s24 = int_to_ptr.vmem [resolvable:$false] %s697_s24 }
  0x18   : > { %p695_p5 = pnand %p693_p3, %p681_p2  ;;  %s699_s26 = scalar_lea.vmem %s698_s24, 4096 }
  0x19   : > { %p700_p7 = scmp.lt.s32.totalorder %s208_s12, %s698_s24  ;;  %p701_p10 = scmp.lt.s32.totalorder %s699_s26, %s692_s21 }
  0x1a   : > { %p696_p6 = pneg %p695_p5 }
  0x1b   : > { %p702_p12 = por %p701_p10, %p700_p7 }
  0x1d   : > { %p703_p4 = pnand %p702_p12, %p696_p6 }
  0x1f   : > { %706 = shalt.err (!%p703_p4)
}
  0x20   : > { %s790_s25 = smov 128   ;;  %s791_s5 = smov 8  }
  0x21   : > { %616 = dma.hbm_to_vmem [thread:$0]  (!%p892_p0), %s206_s10, 2048, %s208_s12, %s197_s14, %s790_s25, %s790_s25, %s791_s5  }
  0x22   : > { %p221_p13 = scmp.lt.s32.totalorder %s787_s20, 3 }
  0x24   : > { %p222_p2 = pnand %p547_p1, %p221_p13 }
  0x25   : > { %s905_s6 = sand.u32 (!%p222_p2), 1, %s771_s16  }
  0x26   : > { %225 = sbr.rel (%p222_p2) target bundleno = 351 (0x15f), region = 36  ;;  %s548_s7 = sshll.u32 (!%p222_p2), %s905_s6, 7 }
  0x27   : > { %s228_s8 = scalar_lea.sflag (!%p222_p2), [#allocation3], %s905_s6  ;;  %s909_s9 = scalar_lea.vmem (!%p222_p2), [#allocation2], %s548_s7 }
  0x2b   : > { %758 = dma.done.wait (%p868_p8), %s228_s8, 2048  }
  0x2c   : > { %760 = vsyncadd (%p868_p8), %s228_s8, 4294965248  ;;  %v792_v0 = vmov 0.0   ;;  %vm793_vm0 = vmmov 0   ;;  %v794_v1 = vmov 0   ;;  %v295_v2 = vld [vmem:[%s909_s9 + $0x78] sm:$0xff]  ;;  %v294_v3 = vld [vmem:[%s909_s9 + $0x70] sm:$0xff]  ;;  %v388_v28 = vlaneseq }
  0x2d   : > { %574 = vmatprep.subr.mxu0 %v792_v0  ;;  %606 = vmatprep.mubr.msk.f32.mxu0 %vm793_vm0, %v792_v0  ;;  %v393_v4 = vld [vmem:[%s992_s3] sm:$0xff]  ;;  %v293_v5 = vld [vmem:[%s909_s9 + $0x68] sm:$0xff]  ;;  %v291_v7 = vld [vmem:[%s909_s9 + $0x58] sm:$0xff]  ;;  %p272_p8 = scmp.lt.s32.totalorder %s779_s18, 1  ;;  %s551_s24 = sshll.u32 %s779_s18, 7 }
  0x2e   : > { %676 = vset.pattern.permute.xlu0 %v794_v1  ;;  %575 = vmatpush3.xpose.msra.mxu0 %v295_v2  ;;  %v292_v6 = vld [vmem:[%s909_s9 + $0x60] sm:$0xff]  ;;  %v290_v8 = vld [vmem:[%s909_s9 + $0x50] sm:$0xff]  ;;  %v289_v9 = vld [vmem:[%s909_s9 + $0x48] sm:$0xff]  ;;  %v389_v29 = vand.u32 127, %v388_v28  ;;  %v391_v30 = vstv %s551_s24  ;;  %s549_s26 = sshll.u32 %s905_s6, 3  ;;  %s947_s8 = scalar_lea.hbm %s993_s4, %s551_s24 }
  0x2f   : > { %576 = vmatprep.subr.mxu0 %v792_v0  ;;  %395 = vperm.xlu0 %676, %v393_v4   ;;  %v288_v10 = vld [vmem:[%s909_s9 + $0x40] sm:$0xff]  ;;  %v287_v11 = vld [vmem:[%s909_s9 + $0x38] sm:$0xff]  ;;  %v286_v12 = vld [vmem:[%s909_s9 + $0x30] sm:$0xff]  ;;  %s273_s13 = scalar_select %p272_p8, %s779_s18, 1 }
  0x30   : > { %v285_v13 = vld [vmem:[%s909_s9 + $0x28] sm:$0xff]  ;;  %v284_v14 = vld [vmem:[%s909_s9 + $0x20] sm:$0xff]  ;;  %v283_v15 = vld [vmem:[%s909_s9 + $0x18] sm:$0xff]  ;;  %v392_v34 = vadd.s32 %v391_v30, %v389_v29  ;;  %s266_s18 = scalar_lea.vmem [#allocation5], %s549_s26  ;;  %s795_s27 = smov [#allocation5]  }
  0x31   : > { %v282_v16 = vld [vmem:[%s909_s9 + $0x10] sm:$0xff]  ;;  %v281_v17 = vld [vmem:[%s909_s9 + $0x8] sm:$0xff]  ;;  %v280_v18 = vld [vmem:[%s909_s9] sm:$0xff]  ;;  %s274_s22 = scalar_lea.vmem %s991_s2, %s273_s13  ;;  %s419_s25 = sshll.u32 %s266_s18, 4  ;;  %s420_s25 = int_to_ptr.vmem [resolvable:$true] %s419_s25 }
  0x32   : > { %577 = vmatpush3.xpose.msra.mxu0 %v294_v3  ;;  %v279_v19 = vld [vmem:[%s989_s0] sm:$0xff]  ;;  %vm399_vm4 = vcmp.lt.s32.totalorder %v392_v34, 256  ;;  %s404_s9 = scalar_lea.sflag [#allocation4], %s905_s6  ;;  %s707_s10 = scalar_lea.vmem %s420_s25, 128 }
  0x33   : > { %578 = vmatprep.subr.mxu0 %v792_v0  ;;  %v550_v20 = vld [vmem:[%s274_s22] ss:$0 sm:$0xff]  ;;  %p708_p12 = scmp.ne.s32.totalorder %s420_s25, %s707_s10  ;;  %s711_s11 = sshll.u32 %s795_s27, 4  ;;  %s712_s11 = int_to_ptr.vmem [resolvable:$false] %s711_s11 }
  0x34   : > { %s713_s12 = scalar_lea.vmem %s712_s11, 256  ;;  %p714_p3 = scmp.lt.s32.totalorder %s420_s25, %s712_s11 }
  0x35   : > { %p709_p0 = pnand %p708_p12, %p872_p9  ;;  %p715_p5 = scmp.lt.s32.totalorder %s713_s12, %s707_s10 }
  0x36   : > { %579 = vmatpush3.xpose.msra.mxu0 %v293_v5 }
  0x37   : > { %580 = vmatprep.subr.mxu0 %v792_v0  ;;  %p710_p1 = pneg %p709_p0  ;;  %p716_p6 = por %p715_p5, %p714_p3 }
  0x39   : > { %p717_p7 = pnand %p716_p6, %p710_p1 }
  0x3a   : > { %581 = vmatpush3.xpose.msra.mxu0 %v292_v6 }
  0x3b   : > { %582 = vmatprep.subr.mxu0 %v792_v0 }
  0x3e   : > { %583 = vmatpush3.xpose.msra.mxu0 %v291_v7 }
  0x3f   : > { %584 = vmatprep.subr.mxu0 %v792_v0 }
  0x42   : > { %585 = vmatpush3.xpose.msra.mxu0 %v290_v8 }
  0x43   : > { %586 = vmatprep.subr.mxu0 %v792_v0 }
  0x46   : > { %587 = vmatpush3.xpose.msra.mxu0 %v289_v9 }
  0x47   : > { %588 = vmatprep.subr.mxu0 %v792_v0 }
  0x4a   : > { %589 = vmatpush3.xpose.msra.mxu0 %v288_v10 }
  0x4b   : > { %590 = vmatprep.subr.mxu0 %v792_v0 }
  0x4e   : > { %591 = vmatpush3.xpose.msra.mxu0 %v287_v11 }
  0x4f   : > { %592 = vmatprep.subr.mxu0 %v792_v0 }
  0x52   : > { %593 = vmatpush3.xpose.msra.mxu0 %v286_v12 }
  0x53   : > { %594 = vmatprep.subr.mxu0 %v792_v0 }
  0x56   : > { %595 = vmatpush3.xpose.msra.mxu0 %v285_v13 }
  0x57   : > { %596 = vmatprep.subr.mxu0 %v792_v0 }
  0x5a   : > { %597 = vmatpush3.xpose.msra.mxu0 %v284_v14 }
  0x5b   : > { %598 = vmatprep.subr.mxu0 %v792_v0 }
  0x5e   : > { %599 = vmatpush3.xpose.msra.mxu0 %v283_v15 }
  0x5f   : > { %600 = vmatprep.subr.mxu0 %v792_v0 }
  0x62   : > { %601 = vmatpush3.xpose.msra.mxu0 %v282_v16 }
  0x63   : > { %602 = vmatprep.subr.mxu0 %v792_v0 }
  0x66   : > { %603 = vmatpush3.xpose.msra.mxu0 %v281_v17 }
  0x67   : > { %604 = vmatprep.subr.mxu0 %v792_v0 }
  0x6a   : > { %605 = vmatpush3.xpose.msra.mxu0 %v280_v18 }
  0x6d   : > { %607 = vmatmul.mubr.f32.vlgmr.msra.gmra.mxu0 %v279_v19 }
  0xaa   : > { %v396_v36 = vpop.permute.xlu0 %395 }
  0xab   : > { %vm397_vm3 = vcmp.eq.s32.totalorder %v392_v34, %v396_v36 }
 0x12d   : > { %v362_v21 = vpop.f32.mrf.mxu0 }
 0x12e   : > { %v373_v22 = vmul.f32 %v550_v20, %v362_v21 }
 0x12f   : > { %v608_v23 = vpop.f32.mrf.mxu0 }
 0x130   : > { %v374_v24 = vmul.f32 %v373_v22, %v373_v22  ;;  %v385_v38 = vmul.f32 0.87758255, %v373_v22 }
 0x132   : > { %v375_v25 = vsub.f32 1.0, %v374_v24 }
 0x134   : > { %v376_v26 = vmax.f32 %v375_v25, 0.0 }
 0x136   : > { %v377_v27 = vmin.f32 %v376_v26, 1.0 }
 0x138   : > { %677 = vrsqrt.f32 %v377_v27  ;;  %vm380_vm1 = vcmp.eq.f32.partialorder %v377_v27, inf  ;;  %v383_v33 = vand.u32 2147483648, %v377_v27  ;;  %vm382_vm2 = vcmp.eq.f32.partialorder %v377_v27, 0.0 }
 0x145   : > { %v678_v31 = vpop.eup %677 }
 0x146   : > { %v379_v32 = vmul.f32 %v678_v31, %v377_v27 }
 0x148   : > { %v381_v35 = vsel %vm380_vm1, %v377_v27, %v379_v32 }
 0x149   : > { %v384_v37 = vsel %vm382_vm2, %v383_v33, %v381_v35 }
 0x14a   : > { %v386_v39 = vmul.f32 0.47942555, %v384_v37 }
 0x14c   : > { %v387_v40 = vsub.f32 %v385_v38, %v386_v39 }
 0x14e   : > { %v398_v41 = vsel %vm397_vm3, %v387_v40, %v373_v22 }
 0x14f   : > { %v400_v42 = vsel %vm399_vm4, %v398_v41, 0.0 }
 0x150   : > { %v401_v43 = vmul.f32 30.0, %v400_v42 }
 0x152   : > { %402 = vst [vmem:[%s266_s18] sm:$0xff] %v401_v43 }
 0x153   : > { %720 = shalt.err (!%p717_p7)
}
 0x154   : > { %s721_s13 = scalar_lea.hbm %s947_s8, 128  ;;  %s725_s21 = scalar_lea.hbm %s993_s4, 256 }
 0x155   : > { %p722_p10 = scmp.ne.s32.totalorder %s947_s8, %s721_s13  ;;  %p726_p2 = scmp.lt.s32.totalorder %s947_s8, %s993_s4 }
 0x156   : > { %p727_p8 = scmp.lt.s32.totalorder %s725_s21, %s721_s13 }
 0x157   : > { %p723_p4 = pnand %p722_p10, %p872_p9 }
 0x158   : > { %p728_p12 = por %p727_p8, %p726_p2 }
 0x159   : > { %p724_p13 = pneg %p723_p4 }
 0x15b   : > { %p729_p0 = pnand %p728_p12, %p724_p13 }
 0x15d   : > { %732 = shalt.err (!%p729_p0)
}
 0x15e   : > { %611 = dma.vmem_to_hbm [thread:$0]  (%p872_p9), %s420_s25, 128, %s947_s8, %s404_s9  }
 0x15f PF: > { %s431_s26 = sand.u32 1, %s767_s15   ;;  %p999_p1 = scmp.ge.s32.totalorder %s787_s20, 2 }
 0x160   : > { %s432_s18 = scalar_lea.sflag [#allocation4], %s431_s26 }
 0x161   : > { %p618_p3 = pnand %p999_p1, %p879_p11 }
 0x163   : > { %p619_p5 = pneg %p618_p3 }
 0x165   : > { %762 = dma.done.wait (%p619_p5), %s432_s18, 128  }
 0x166   : > { %764 = vsyncadd (%p619_p5), %s432_s18, 4294967168  ;;  %s20_s20 = sadd.s32 1, %s787_s20   ;;  %s1000_s15 = smov %s771_s16 }
 0x167   : > { %p17_p6 = scmp.ge.s32.totalorder %s20_s20, 4   ;;  %s1001_s16 = smov %s775_s17 }
 0x168   : > { %s1002_s17 = smov %s877_s29  ;;  %s1003_s18 = smov %s783_s19 }
 0x169   : > { %s1004_s19 = smov %s1006_s23  ;;  %19 = sbr.rel (!%p17_p6) target bundleno = 6 (0x6), region = 90 }
 0x16e   :  { %437 = vsyncpa [#allocation3], 1 }
 0x16f   :  { %439 = vsyncpa [#allocation3 + $0x1], 1 }
 0x170   :  { %440 = vsyncpa [#allocation4], 1 }
 0x171   :  { %442 = vsyncpa [#allocation4 + $0x1], 1 }

</bundles_post_ra>
